<compile_context>
chip_gen: v5e
topology: v5e:2x2
jax: 0.10.0
libtpu: 0.0.40
codegen_flags: <defaults>
</compile_context>

<pallas_src>
import jax
import jax.numpy as jnp
from jax.experimental import pallas as pl
from jax.experimental.pallas import tpu as pltpu


def _tlu_kernel(x_ref, tau_ref, o_ref):
    # x_ref: (tm, tn) tile of the (N*C, H*W) slab.
    # tau_ref: (tm, 1) per-row threshold, broadcast across the lane dimension.
    o_ref[...] = jnp.maximum(x_ref[...], tau_ref[...])


def _pick_tiles(m, hw, dtype_bytes, target_tile_bytes):
    """Pick (tm, tn) so one tile is ~a few MiB and lane-dense, respecting (8, 128)."""
    target_elems = max(1, target_tile_bytes // dtype_bytes)
    if hw * 8 <= target_elems:
        # Whole rows fit comfortably in the budget: keep the full H*W on lanes.
        tn = hw
        rows = max(1, target_elems // hw)
        if rows >= m:
            tm = m                       # block == full dim (always legal)
        else:
            tm = max(8, (rows // 8) * 8)  # multiple of 8; ragged tail handled by cdiv grid
    else:
        # A single 8-row slab of full-width rows already exceeds the budget: tile lanes too.
        tm = m if m < 8 else 8
        tn = max(128, (target_elems // (tm * 128)) * 128)  # multiple of 128
        if tn >= hw:
            tn = hw
    return tm, tn


def tlu_forward(x_nchw: jax.Array, tau: jax.Array, *, target_tile_bytes: int = 4 << 20) -> jax.Array:
    """max(x, tau) with tau of shape (1, C, 1, 1); x in NCHW (native layout, no transpose)."""
    n, c, h, w = x_nchw.shape
    assert tau.shape == (1, c, 1, 1)
    hw = h * w
    m = n * c

    # Free reshapes in the native layout — no extra HBM passes.
    x2d = x_nchw.reshape(m, hw)
    # Per-row threshold column: row r of the (N*C, H*W) slab is channel r % C.
    tau_rows = jnp.broadcast_to(
        tau.reshape(1, c).astype(x_nchw.dtype), (n, c)
    ).reshape(m, 1)

    tm, tn = _pick_tiles(m, hw, x2d.dtype.itemsize, target_tile_bytes)
    grid = (pl.cdiv(m, tm), pl.cdiv(hw, tn))

    out2d = pl.pallas_call(
        _tlu_kernel,
        out_shape=jax.ShapeDtypeStruct((m, hw), x2d.dtype),
        grid_spec=pl.GridSpec(
            grid=grid,
            in_specs=[
                pl.BlockSpec((tm, tn), lambda i, j: (i, j)),  # x tile (lane-dense)
                pl.BlockSpec((tm, 1), lambda i, j: (i, 0)),   # per-row tau column
            ],
            out_specs=pl.BlockSpec((tm, tn), lambda i, j: (i, j)),
        ),
        compiler_params=pltpu.CompilerParams(
            dimension_semantics=("parallel", "parallel"),
            vmem_limit_bytes=48 << 20,  # safe on v5e/v6e/v7x; tiles stay ~4 MiB each
        ),
    )(x2d, tau_rows)

    # Free reshape back to NCHW.
    return out2d.reshape(n, c, h, w)


if __name__ == "__main__":
    key = jax.random.PRNGKey(0)
    N, C, H, W = 2, 4, 16, 16

    x = jax.random.normal(key, (N, C, H, W), dtype=jnp.float32)
    # Deterministic parameter init, matching nn.init.zeros_(self.tau)
    tau = jnp.zeros((1, C, 1, 1), dtype=jnp.float32)

    out = tlu_forward(x, tau)
    jax.block_until_ready(out)

    # Reference check (plain JAX): max(x, tau) with broadcasting.
    ref = jnp.maximum(x, tau)
    assert out.shape == (N, C, H, W)
    assert jnp.allclose(out, ref), "mismatch vs reference"

    print("KERNEL_OK")
</pallas_src>

<mosaic_0001>
module attributes {stable_mosaic.version = 11 : i64} {
  func.func @_tlu_kernel(%arg0: i32, %arg1: i32, %arg2: memref<8x256xf32, #tpu.memory_space<vmem>>, %arg3: memref<8x1xf32, #tpu.memory_space<vmem>>, %arg4: memref<8x256xf32, #tpu.memory_space<vmem>>) attributes {dimension_semantics = [#tpu.dimension_semantics<parallel>, #tpu.dimension_semantics<parallel>], iteration_bounds = array<i64: 1, 1>, scalar_prefetch = 0 : i64, scratch_operands = 0 : i64, tpu.core_type = #tpu.core_type<tc>, window_params = [{transform_indices = @transform_0, window_bounds = array<i64: 8, 256>}, {transform_indices = @transform_1, window_bounds = array<i64: 8, 1>}, {transform_indices = @transform_2, window_bounds = array<i64: 8, 256>}]} {
    %c0 = arith.constant 0 : index
    %c0_0 = arith.constant 0 : index
    %0 = vector.load %arg2[%c0, %c0_0] : memref<8x256xf32, #tpu.memory_space<vmem>>, vector<8x256xf32>
    %c0_1 = arith.constant 0 : index
    %c0_2 = arith.constant 0 : index
    %1 = vector.load %arg3[%c0_1, %c0_2] : memref<8x1xf32, #tpu.memory_space<vmem>>, vector<8x1xf32>
    %2 = vector.broadcast %1 : vector<8x1xf32> to vector<8x256xf32>
    %3 = arith.maximumf %0, %2 : vector<8x256xf32>
    %c0_3 = arith.constant 0 : index
    %c0_4 = arith.constant 0 : index
    %4 = vector.load %arg4[%c0_3, %c0_4] : memref<8x256xf32, #tpu.memory_space<vmem>>, vector<8x256xf32>
    tpu.vector_store %arg4[%c0_3, %c0_4], %3 {strides = array<i32>} : memref<8x256xf32, #tpu.memory_space<vmem>>, vector<8x256xf32>,
    return
  }
  func.func @transform_0(%arg0: i32, %arg1: i32) -> (i32, i32) {
    %c0_i32 = arith.constant 0 : i32
    return %arg0, %arg1 : i32, i32
  }
  func.func @transform_1(%arg0: i32, %arg1: i32) -> (i32, i32) {
    %c0_i32 = arith.constant 0 : i32
    %c0_i32_0 = arith.constant 0 : i32
    return %arg0, %c0_i32 : i32, i32
  }
  func.func @transform_2(%arg0: i32, %arg1: i32) -> (i32, i32) {
    %c0_i32 = arith.constant 0 : i32
    return %arg0, %arg1 : i32, i32
  }
}

</mosaic_0001>

<bundles_post_ra>
// kernel: tpu_custom_call.1
= control target key start
LH: loop header
LB: loop body
LE: loop exit
PB: predicated region body
PF: predicated region fallthrough
CT: control target
= control target key end

     0   :  { %7 = vsyncpa [#allocation3], 0  ;;  %s138_s0 = inlined_call_operand.hbm [shape: f32[8,256], index: 0, kind: input, shape index: {}]   ;;  %s139_s1 = inlined_call_operand.vmem [shape: f32[8,1], index: 1, kind: input, shape index: {}]   ;;  %s140_s2 = inlined_call_operand.hbm [shape: f32[8,256], index: 2, kind: output, shape index: {}]  }
   0x1   :  { %8 = vsyncpa [#allocation4], 0  ;;  %s14_s11 = sshll.u32 %s138_s0, 4  ;;  %s111_s12 = smov [#allocation2]   ;;  %s15_s11 = int_to_ptr.hbm [resolvable:$true] %s14_s11 }
   0x2   :  { %s16_s13 = sshll.u32 %s111_s12, 4  ;;  %s17_s13 = int_to_ptr.vmem [resolvable:$true] %s16_s13 }
   0x3   :  { %19 = dma.hbm_to_vmem [thread:$0]  %s15_s11, 256, %s17_s13, [#allocation3]  }
   0x4   :  { %107 = dma.done.wait [#allocation3], 256  }
   0x5   :  { %108 = vsyncadd [#allocation3], 4294967040  ;;  %v112_v0 = vmov 0   ;;  %v28_v1 = vld [vmem:[%s139_s1] sm:$0xff]  ;;  %v27_v3 = vld [vmem:[#allocation2 + $0x8] sm:$0xff]  ;;  %s113_s16 = smov [#allocation5]  }
   0x6   :  { %58 = vset.pattern.permute.xlu0 %v112_v0  ;;  %v26_v2 = vld [vmem:[#allocation2] sm:$0xff]  ;;  %s43_s17 = sshll.u32 %s113_s16, 4  ;;  %s45_s19 = sshll.u32 %s140_s2, 4  ;;  %s44_s17 = int_to_ptr.vmem [resolvable:$true] %s43_s17  ;;  %s46_s19 = int_to_ptr.hbm [resolvable:$true] %s45_s19 }
   0x7   :  { %31 = vperm.xlu0 %58, %v28_v1  }
  0x79   :  { %v32_v4 = vpop.permute.xlu0 %31 }
  0x7a   :  { %v34_v5 = vmax.f32 %v26_v2, %v32_v4  ;;  %v35_v6 = vmax.f32 %v27_v3, %v32_v4 }
  0x7c   :  { %36 = vst [vmem:[#allocation5] sm:$0xff] %v34_v5 }
  0x7d   :  { %37 = vst [vmem:[#allocation5 + $0x8] sm:$0xff] %v35_v6 }
  0x7e   :  { %48 = dma.vmem_to_hbm [thread:$0]  %s44_s17, 256, %s46_s19, [#allocation4]  }
  0x7f   :  { %109 = dma.done.wait [#allocation4], 256  }
  0x80   :  { %110 = vsyncadd [#allocation4], 4294967040 }
  0x81   :  { %53 = vsyncpa [#allocation3], 1 }
  0x82   :  { %54 = vsyncpa [#allocation4], 1 }

</bundles_post_ra>
